<compile_context>
chip_gen: v5e
topology: v5e:2x2
jax: 0.10.0
libtpu: 0.0.40
codegen_flags: <defaults>
</compile_context>

<pallas_src>
import math
from functools import partial

import jax
import jax.numpy as jnp
from jax.experimental import pallas as pl
from jax.experimental.pallas import tpu as pltpu


def attention_kernel(x_ref, wqkv_ref, wout_ref, bout_ref, o_ref,
                     *, n_heads, head_dim, seq_len, batch_block):
    """Processes `batch_block` batch elements per grid step (channel-major).

    x_ref    : (Bb, C_in, S)     VMEM   (S lane-dense)
    wqkv_ref : (3*H*D, C_in)     VMEM   (1x1 conv weight, no bias)
    wout_ref : (C_out, H*D)      VMEM   (1x1 conv weight)
    bout_ref : (C_out, 1)        VMEM
    o_ref    : (Bb, C_out, S)    VMEM   (S lane-dense -> unmasked stores)
    """
    HD = n_heads * head_dim
    scale = 1.0 / math.sqrt(seq_len)  # SDPA scale = 1/sqrt(E), E = y*x

    wqkv = wqkv_ref[...]              # (3HD, C_in)
    wout = wout_ref[...]              # (C_out, HD)
    bias = bout_ref[...]              # (C_out, 1) -> broadcasts over S

    # Unrolled small loop: amortizes the fixed per-grid-step overhead when
    # several batch elements are merged into one step.
    for bb in range(batch_block):
        x = x_ref[bb]                                                # (C_in, S)

        # 1x1 conv as channel matmul: qkv[o, s] = sum_c wqkv[o, c] * x[c, s]
        qkv = jnp.dot(wqkv, x,
                      preferred_element_type=jnp.float32)            # (3HD, S)

        # Head split along the (sub-lane) channel axis; layout-compatible
        # reshapes (head_dim = 32 is a multiple of 8, lane dim S unchanged).
        q = qkv[:HD].reshape(n_heads, head_dim, seq_len)             # (H, D, S)
        k = qkv[HD:2 * HD].reshape(n_heads, head_dim, seq_len)       # (H, D, S)
        v = qkv[2 * HD:].reshape(n_heads, head_dim, seq_len)         # (H, D, S)

        # scores[h, d1, d2] = sum_s q[h, d1, s] * k[h, d2, s]
        # (all heads in one batched contraction -> one MXU problem, not 4)
        scores = jax.lax.dot_general(
            q, k, (((2,), (2,)), ((0,), (0,))),
            preferred_element_type=jnp.float32) * scale              # (H, D, D)

        # numerically-stable softmax over the last (D) axis
        scores = scores - jnp.max(scores, axis=-1, keepdims=True)
        e = jnp.exp(scores)
        denom = jnp.sum(e, axis=-1, keepdims=True)                   # (H, D, 1)
        attn = e * pl.reciprocal(denom, approx=True)                 # EUP slot

        # out[h, d1, s] = sum_d2 attn[h, d1, d2] * v[h, d2, s]
        res = jax.lax.dot_general(
            attn, v, (((2,), (1,)), ((0,), (0,))),
            preferred_element_type=jnp.float32)                      # (H, D, S)
        res = res.reshape(HD, seq_len)                               # (HD, S)

        # 1x1 output conv: (C_out, HD) @ (HD, S) + bias -> lane-dense store.
        out = jnp.dot(wout, res,
                      preferred_element_type=jnp.float32) + bias     # (C_out, S)
        o_ref[bb] = out.astype(o_ref.dtype)


def _pick_batch_block(B):
    """Merge batch elements per grid step, but keep >= 2 grid steps (v7x: 2 TCs)."""
    if B <= 1:
        return 1
    bb = max(1, min(4, B // 2))
    while B % bb != 0:
        bb -= 1
    return bb


def attention_forward(x_nchw, w_qkv, w_out, b_out, *, n_heads=4, head_dim=32):
    """x_nchw: (B, C_in, y, x); w_qkv: (3*H*D, C_in, 1, 1); w_out: (C_out, H*D, 1, 1)."""
    B, C_in, Hy, Wx = x_nchw.shape
    S = Hy * Wx
    HD = n_heads * head_dim
    C_out = w_out.shape[0]

    # glue: channel-major (B, C, S) -- pure reshapes, no HBM transposes.
    x_flat = x_nchw.reshape(B, C_in, S)                  # (B, C_in, S)
    wqkv = w_qkv.reshape(3 * HD, C_in)                   # (3HD, C_in)
    wout = w_out.reshape(C_out, HD)                      # (C_out, HD)
    bout = b_out.reshape(C_out, 1)                       # (C_out, 1)

    bb = _pick_batch_block(B)
    grid = (B // bb,)

    kernel = partial(attention_kernel, n_heads=n_heads, head_dim=head_dim,
                     seq_len=S, batch_block=bb)

    # NOTE: for very large spatial sizes (S in the thousands) the per-step
    # working set grows linearly with S; tile S inside the kernel and set
    # vmem_limit_bytes before running such shapes on v7x (64 MiB VMEM).
    out_flat = pl.pallas_call(
        kernel,
        out_shape=jax.ShapeDtypeStruct((B, C_out, S), x_nchw.dtype),
        grid_spec=pltpu.PrefetchScalarGridSpec(
            num_scalar_prefetch=0,
            grid=grid,
            in_specs=[
                pl.BlockSpec((bb, C_in, S), lambda b: (b, 0, 0)),
                pl.BlockSpec((3 * HD, C_in), lambda b: (0, 0)),
                pl.BlockSpec((C_out, HD), lambda b: (0, 0)),
                pl.BlockSpec((C_out, 1), lambda b: (0, 0)),
            ],
            out_specs=pl.BlockSpec((bb, C_out, S), lambda b: (b, 0, 0)),
        ),
        compiler_params=pltpu.CompilerParams(
            dimension_semantics=("parallel",)),
    )(x_flat, wqkv, wout, bout)

    return out_flat.reshape(B, C_out, Hy, Wx)


def attention_reference(x, w_qkv, w_out, b_out, *, n_heads=4, head_dim=32):
    """Pure-JAX reference mirroring the PyTorch forward."""
    B, C_in, Hy, Wx = x.shape
    S = Hy * Wx
    HD = n_heads * head_dim
    C_out = w_out.shape[0]

    qkv = jnp.einsum('bcyx,oc->boyx', x, w_qkv.reshape(3 * HD, C_in))
    q, k, v = jnp.split(qkv, 3, axis=1)
    r = lambda t: t.reshape(B, n_heads, head_dim, S)
    q, k, v = r(q), r(k), r(v)

    scale = 1.0 / math.sqrt(S)
    scores = jnp.einsum('bhds,bhes->bhde', q, k) * scale
    attn = jax.nn.softmax(scores, axis=-1)
    res = jnp.einsum('bhde,bhes->bhds', attn, v).reshape(B, HD, Hy, Wx)
    out = jnp.einsum('bcyx,oc->boyx', res, w_out.reshape(C_out, HD))
    return out + b_out[None, :, None, None]


if __name__ == "__main__":
    B, C_in, Hy, Wx = 2, 4, 16, 16
    n_heads, head_dim = 4, 32
    C_out = 4
    HD = n_heads * head_dim

    key = jax.random.PRNGKey(0)
    kx, kq, kw, kb = jax.random.split(key, 4)

    x = jax.random.normal(kx, (B, C_in, Hy, Wx), dtype=jnp.float32)
    # deterministic "parameters" (same shapes as the torch Conv2d weights)
    w_qkv = jax.random.normal(kq, (3 * HD, C_in, 1, 1), dtype=jnp.float32) * 0.1
    w_out = jax.random.normal(kw, (C_out, HD, 1, 1), dtype=jnp.float32) * 0.1
    b_out = jax.random.normal(kb, (C_out,), dtype=jnp.float32) * 0.1

    out = attention_forward(x, w_qkv, w_out, b_out,
                            n_heads=n_heads, head_dim=head_dim)
    out = jax.block_until_ready(out)

    ref = attention_reference(x, w_qkv, w_out, b_out,
                              n_heads=n_heads, head_dim=head_dim)
    assert out.shape == (B, C_out, Hy, Wx)
    # tolerance accounts for the EUP approximate reciprocal in the softmax
    assert jnp.allclose(out, ref, atol=2e-3, rtol=2e-3), \
        f"max abs err = {jnp.max(jnp.abs(out - ref))}"

    print("KERNEL_OK")
</pallas_src>

<mosaic_0001>
module attributes {stable_mosaic.version = 11 : i64} {
  func.func @attention_kernel(%arg0: i32, %arg1: memref<1x4x256xf32, #tpu.memory_space<vmem>>, %arg2: memref<384x4xf32, #tpu.memory_space<vmem>>, %arg3: memref<4x128xf32, #tpu.memory_space<vmem>>, %arg4: memref<4x1xf32, #tpu.memory_space<vmem>>, %arg5: memref<1x4x256xf32, #tpu.memory_space<vmem>>) attributes {dimension_semantics = [#tpu.dimension_semantics<parallel>], iteration_bounds = array<i64: 2>, scalar_prefetch = 0 : i64, scratch_operands = 0 : i64, tpu.core_type = #tpu.core_type<tc>, window_params = [{transform_indices = @transform_0, window_bounds = array<i64: 1, 4, 256>}, {pipeline_mode = #tpu.pipeline_mode<synchronous>, transform_indices = @transform_1, window_bounds = array<i64: 384, 4>}, {pipeline_mode = #tpu.pipeline_mode<synchronous>, transform_indices = @transform_2, window_bounds = array<i64: 4, 128>}, {pipeline_mode = #tpu.pipeline_mode<synchronous>, transform_indices = @transform_3, window_bounds = array<i64: 4, 1>}, {transform_indices = @transform_4, window_bounds = array<i64: 1, 4, 256>}]} {
    %c0 = arith.constant 0 : index
    %c0_0 = arith.constant 0 : index
    %0 = vector.load %arg2[%c0, %c0_0] : memref<384x4xf32, #tpu.memory_space<vmem>>, vector<384x4xf32>
    %c0_1 = arith.constant 0 : index
    %c0_2 = arith.constant 0 : index
    %1 = vector.load %arg3[%c0_1, %c0_2] : memref<4x128xf32, #tpu.memory_space<vmem>>, vector<4x128xf32>
    %c0_3 = arith.constant 0 : index
    %c0_4 = arith.constant 0 : index
    %2 = vector.load %arg4[%c0_3, %c0_4] : memref<4x1xf32, #tpu.memory_space<vmem>>, vector<4x1xf32>
    %c0_5 = arith.constant 0 : index
    %c0_6 = arith.constant 0 : index
    %c0_7 = arith.constant 0 : index
    %3 = vector.load %arg1[%c0_5, %c0_6, %c0_7] : memref<1x4x256xf32, #tpu.memory_space<vmem>>, vector<1x4x256xf32>
    %4 = vector.shape_cast %3 : vector<1x4x256xf32> to vector<4x256xf32>
    %cst = arith.constant dense<0.000000e+00> : vector<384x256xf32>
    %5 = tpu.matmul %0, %4, %cst {dimension_numbers = #tpu.dot_dimension_numbers<[1], [0], [0], [1], [0, 0, 1, 1], [], []>} : vector<384x4xf32>, vector<4x256xf32>, vector<384x256xf32> -> vector<384x256xf32>
    %6 = vector.extract_strided_slice %5 {offsets = [0, 0], sizes = [128, 256], strides = [1, 1]} : vector<384x256xf32> to vector<128x256xf32>
    %7 = vector.shape_cast %6 : vector<128x256xf32> to vector<4x32x256xf32>
    %8 = vector.extract_strided_slice %5 {offsets = [128, 0], sizes = [128, 256], strides = [1, 1]} : vector<384x256xf32> to vector<128x256xf32>
    %9 = vector.shape_cast %8 : vector<128x256xf32> to vector<4x32x256xf32>
    %10 = vector.extract_strided_slice %5 {offsets = [256, 0], sizes = [128, 256], strides = [1, 1]} : vector<384x256xf32> to vector<128x256xf32>
    %11 = vector.shape_cast %10 : vector<128x256xf32> to vector<4x32x256xf32>
    %cst_8 = arith.constant dense<0.000000e+00> : vector<4x32x32xf32>
    %12 = tpu.matmul %7, %9, %cst_8 {dimension_numbers = #tpu.dot_dimension_numbers<[2], [2], [1], [1], [0, 0, 0, 1, 1, 1], [0], [0]>} : vector<4x32x256xf32>, vector<4x32x256xf32>, vector<4x32x32xf32> -> vector<4x32x32xf32>
    %cst_9 = arith.constant 6.250000e-02 : f32
    %13 = vector.broadcast %cst_9 : f32 to vector<4x32x32xf32>
    %14 = arith.mulf %12, %13 : vector<4x32x32xf32>
    %cst_10 = arith.constant dense<0xFF800000> : vector<4x32xf32>
    %15 = vector.multi_reduction <maximumf>, %14, %cst_10 [2] : vector<4x32x32xf32> to vector<4x32xf32>
    %16 = vector.shape_cast %15 : vector<4x32xf32> to vector<4x32x1xf32>
    %17 = vector.broadcast %16 : vector<4x32x1xf32> to vector<4x32x32xf32>
    %18 = arith.subf %14, %17 : vector<4x32x32xf32>
    %19 = math.exp %18 : vector<4x32x32xf32>
    %cst_11 = arith.constant dense<0.000000e+00> : vector<4x32xf32>
    %20 = vector.multi_reduction <add>, %19, %cst_11 [2] : vector<4x32x32xf32> to vector<4x32xf32>
    %21 = vector.shape_cast %20 : vector<4x32xf32> to vector<4x32x1xf32>
    %22 = tpu.reciprocal %21 {approx = true} : vector<4x32x1xf32> -> vector<4x32x1xf32>
    %23 = vector.broadcast %22 : vector<4x32x1xf32> to vector<4x32x32xf32>
    %24 = arith.mulf %19, %23 : vector<4x32x32xf32>
    %cst_12 = arith.constant dense<0.000000e+00> : vector<4x32x256xf32>
    %25 = tpu.matmul %24, %11, %cst_12 {dimension_numbers = #tpu.dot_dimension_numbers<[2], [1], [1], [2], [0, 0, 0, 1, 1, 2], [0], [0]>} : vector<4x32x32xf32>, vector<4x32x256xf32>, vector<4x32x256xf32> -> vector<4x32x256xf32>
    %26 = vector.shape_cast %25 : vector<4x32x256xf32> to vector<128x256xf32>
    %cst_13 = arith.constant dense<0.000000e+00> : vector<4x256xf32>
    %27 = tpu.matmul %1, %26, %cst_13 {dimension_numbers = #tpu.dot_dimension_numbers<[1], [0], [0], [1], [0, 0, 1, 1], [], []>} : vector<4x128xf32>, vector<128x256xf32>, vector<4x256xf32> -> vector<4x256xf32>
    %28 = vector.broadcast %2 : vector<4x1xf32> to vector<4x256xf32>
    %29 = arith.addf %27, %28 : vector<4x256xf32>
    %c0_14 = arith.constant 0 : index
    %c0_15 = arith.constant 0 : index
    %c0_16 = arith.constant 0 : index
    %30 = vector.load %arg5[%c0_14, %c0_15, %c0_16] : memref<1x4x256xf32, #tpu.memory_space<vmem>>, vector<1x4x256xf32>
    %31 = vector.shape_cast %30 : vector<1x4x256xf32> to vector<4x256xf32>
    %32 = vector.shape_cast %29 : vector<4x256xf32> to vector<1x4x256xf32>
    tpu.vector_store %arg5[%c0_14, %c0_15, %c0_16], %32 {strides = array<i32>} : memref<1x4x256xf32, #tpu.memory_space<vmem>>, vector<1x4x256xf32>,
    return
  }
  func.func @transform_0(%arg0: i32) -> (i32, i32, i32) {
    %c0_i32 = arith.constant 0 : i32
    %c0_i32_0 = arith.constant 0 : i32
    %c0_i32_1 = arith.constant 0 : i32
    return %arg0, %c0_i32, %c0_i32_0 : i32, i32, i32
  }
  func.func @transform_1(%arg0: i32) -> (i32, i32) {
    %c0_i32 = arith.constant 0 : i32
    %c0_i32_0 = arith.constant 0 : i32
    %c0_i32_1 = arith.constant 0 : i32
    return %c0_i32, %c0_i32_0 : i32, i32
  }
  func.func @transform_2(%arg0: i32) -> (i32, i32) {
    %c0_i32 = arith.constant 0 : i32
    %c0_i32_0 = arith.constant 0 : i32
    %c0_i32_1 = arith.constant 0 : i32
    return %c0_i32, %c0_i32_0 : i32, i32
  }
  func.func @transform_3(%arg0: i32) -> (i32, i32) {
    %c0_i32 = arith.constant 0 : i32
    %c0_i32_0 = arith.constant 0 : i32
    %c0_i32_1 = arith.constant 0 : i32
    return %c0_i32, %c0_i32_0 : i32, i32
  }
  func.func @transform_4(%arg0: i32) -> (i32, i32, i32) {
    %c0_i32 = arith.constant 0 : i32
    %c0_i32_0 = arith.constant 0 : i32
    %c0_i32_1 = arith.constant 0 : i32
    return %arg0, %c0_i32, %c0_i32_0 : i32, i32, i32
  }
}

</mosaic_0001>

<bundles_post_ra>
// kernel: tpu_custom_call.1
= control target key start
LH: loop header
LB: loop body
LE: loop exit
PB: predicated region body
PF: predicated region fallthrough
CT: control target
= control target key end

     0   :  { %9 = vsyncpa [#allocation3], 0  ;;  %s2553_s0 = inlined_call_operand.vmem [shape: f32[2,4,256], index: 0, kind: input, shape index: {}]   ;;  %s2554_s1 = inlined_call_operand.vmem [shape: f32[384,4], index: 1, kind: input, shape index: {}]   ;;  %s2555_s2 = inlined_call_operand.vmem [shape: f32[4,128], index: 2, kind: input, shape index: {}]   ;;  %s2556_s3 = inlined_call_operand.vmem [shape: f32[4,1], index: 3, kind: input, shape index: {}]   ;;  %s2557_s4 = inlined_call_operand.hbm [shape: f32[2,4,256], index: 4, kind: output, shape index: {}]  }
   0x1   :  { %11 = vsyncpa [#allocation3 + $0x1], 0  ;;  %s1897_s15 = smov 0   ;;  %s1899_s16 = smov 0  }
   0x2   :  { %s1901_s17 = smov 0   ;;  %s1903_s18 = smov 0  }
   0x3 LB: > { %s1918_s19 = sadd.s32 4294967295, %s1869_s18   ;;  %s1555_s20 = sadd.s32 4294967294, %s1869_s18   ;;  %s1869_s18 = sphi %s1903_s18, %s2563_s18   ;;  %s1865_s17 = sphi %s1901_s17, %s2562_s17   ;;  %s1861_s16 = sphi %s1899_s16, %s2561_s16   ;;  %s1857_s15 = sphi %s1897_s15, %s2560_s15  }
   0x4   : > { %s1922_s21 = sadd.s32 1, %s1869_s18   ;;  %s113_s22 = sadd.s32 1, %s1865_s17 }
   0x5   : > { %s110_s23 = ssub.s32 %s1869_s18, %s1922_s21  ;;  %p123_p0 = scmp.ne.s32.totalorder %s1865_s17, %s1861_s16 }
   0x6   : > { %p111_p1 = scmp.eq.s32.totalorder %s110_s23, 0  ;;  %p124_p2 = scmp.eq.s32.totalorder %s1918_s19, 1 }
   0x7   : > { %p129_p3 = scmp.ne.s32.totalorder %s1861_s16, %s1857_s15  ;;  %p130_p4 = scmp.eq.s32.totalorder %s1555_s20, 1 }
   0x8   : > { %s1933_s24 = scalar_select %p111_p1, %s1865_s17, %s113_s22  }
   0x9   : > { %p1935_p5 = por %p124_p2, %p123_p0  ;;  %p1939_p6 = por %p130_p4, %p129_p3 }
   0xa   : > { %p1558_p7 = scmp.ge.s32.totalorder %s1869_s18, 1  ;;  %p165_p8 = scmp.lt.s32.totalorder %s1869_s18, 3 }
   0xc   : > { %p166_p9 = pnand %p1558_p7, %p165_p8 }
   0xd   : > { %p191_p10 = scmp.lt.s32.totalorder (!%p166_p9), %s1918_s19, 1  ;;  %s188_s30 = sand.u32 (!%p166_p9), 1, %s1861_s16  }
   0xe   : > { %169 = sbr.rel (%p166_p9) target bundleno = 1212 (0x4bc), region = 36  ;;  %s1698_s6 = sshll.u32 (!%p166_p9), %s1918_s19, 3 }
   0xf   : > { %s1491_s9 = scalar_lea.hbm (!%p166_p9), %s2557_s4, %s1698_s6  ;;  %s1827_s23 = scalar_lea.hbm (!%p166_p9), %s2557_s4, 16 }
  0x10   : > { %s1495_s12 = sshll.u32 (!%p166_p9), %s1491_s9, 4  ;;  %s1496_s12 = int_to_ptr.hbm [resolvable:$true] %s1495_s12 }
  0x11   : > { %s1821_s13 = sshra.s32 (!%p166_p9), %s1496_s12, 4  ;;  %s1822_s13 = int_to_ptr.hbm [resolvable:$true] %s1821_s13 }
  0x12   : > { %s1823_s14 = scalar_lea.hbm (!%p166_p9), %s1822_s13, 8  ;;  %p1828_p0 = scmp.lt.s32.totalorder (!%p166_p9), %s1822_s13, %s2557_s4 }
  0x13   : > { %s192_s27 = scalar_select %p191_p10, %s1918_s19, 1  ;;  %vm396_vm0 = vcmask 1043456   ;;  %v196_v1 = vld [vmem:[%s2554_s1] sm:$0xff]  ;;  %vm251_vm1 = vcmask 31744   ;;  %v197_v4 = vld [vmem:[%s2554_s1 + $0x8] sm:$0xff]  ;;  %v198_v5 = vld [vmem:[%s2554_s1 + $0x10] sm:$0xff] }
  0x14   : > { %v199_v6 = vld [vmem:[%s2554_s1 + $0x18] sm:$0xff]  ;;  %v200_v7 = vld [vmem:[%s2554_s1 + $0x20] sm:$0xff]  ;;  %v201_v8 = vld [vmem:[%s2554_s1 + $0x28] sm:$0xff]  ;;  %vm971_vm2 = vcmask 261120   ;;  %s1480_s19 = scalar_lea.sflag [#allocation3], %s188_s30  ;;  %p1824_p11 = scmp.ne.s32.totalorder %s1822_s13, %s1823_s14 }
  0x15   : > { %s1697_s28 = sshll.u32 %s192_s27, 3  ;;  %v202_v9 = vld [vmem:[%s2554_s1 + $0x30] sm:$0xff]  ;;  %v203_v10 = vld [vmem:[%s2554_s1 + $0x38] sm:$0xff]  ;;  %v204_v11 = vld [vmem:[%s2554_s1 + $0x40] sm:$0xff]  ;;  %p1829_p1 = scmp.lt.s32.totalorder %s1827_s23, %s1823_s14 }
  0x16   : > { %s195_s5 = scalar_lea.vmem %s2553_s0, %s1697_s28  ;;  %v205_v12 = vld [vmem:[%s2554_s1 + $0x48] sm:$0xff]  ;;  %v206_v13 = vld [vmem:[%s2554_s1 + $0x50] sm:$0xff]  ;;  %v207_v14 = vld [vmem:[%s2554_s1 + $0x58] sm:$0xff]  ;;  %p1825_p12 = pnand %p1824_p11, %p1935_p5 }
  0x17   : > { %v246_v0 = vld [vmem:[%s195_s5] sm:$0xff]  ;;  %v209_v16 = vld [vmem:[%s2554_s1 + $0x68] sm:$0xff]  ;;  %v210_v17 = vld [vmem:[%s2554_s1 + $0x70] sm:$0xff]  ;;  %s1559_s5 = sshll.u32 %s188_s30, 3  ;;  %p1830_p2 = por %p1829_p1, %p1828_p0 }
  0x18   : > { %248 = vst [vmem:[#allocation1] ss:$2 sm:$0xff] %v246_v0  ;;  %v208_v15 = vld [vmem:[%s2554_s1 + $0x60] sm:$0xff]  ;;  %v211_v18 = vld [vmem:[%s2554_s1 + $0x78] sm:$0xff]  ;;  %v213_v24 = vld [vmem:[%s2554_s1 + $0x88] sm:$0xff]  ;;  %s190_s10 = scalar_lea.vmem [#allocation2], %s1559_s5  ;;  %p1826_p13 = pneg %p1825_p12 }
  0x19   : > { %v212_v21 = vld [vmem:[%s2554_s1 + $0x80] sm:$0xff]  ;;  %v214_v27 = vld [vmem:[%s2554_s1 + $0x90] sm:$0xff]  ;;  %v215_v30 = vld [vmem:[%s2554_s1 + $0x98] sm:$0xff]  ;;  %s1493_s11 = sshll.u32 %s190_s10, 4  ;;  %s1494_s11 = int_to_ptr.vmem [resolvable:$true] %s1493_s11 }
  0x1a   : > { %v216_v33 = vld [vmem:[%s2554_s1 + $0xa0] sm:$0xff]  ;;  %v217_v36 = vld [vmem:[%s2554_s1 + $0xa8] sm:$0xff]  ;;  %v218_v39 = vld [vmem:[%s2554_s1 + $0xb0] sm:$0xff]  ;;  %p1831_p3 = pnand %p1830_p2, %p1826_p13 }
  0x1b   : > { %v219_v42 = vld [vmem:[%s2554_s1 + $0xb8] sm:$0xff]  ;;  %v220_v45 = vld [vmem:[%s2554_s1 + $0xc0] sm:$0xff]  ;;  %v221_v48 = vld [vmem:[%s2554_s1 + $0xc8] sm:$0xff] }
  0x1c   : > { %v237_v49 = vld [vmem:[%s2554_s1 + $0x148] sm:$0xff]  ;;  %v222_v52 = vld [vmem:[%s2554_s1 + $0xd0] sm:$0xff]  ;;  %v223_v56 = vld [vmem:[%s2554_s1 + $0xd8] sm:$0xff] }
  0x1d   : > { %v238_v53 = vld [vmem:[%s2554_s1 + $0x150] sm:$0xff]  ;;  %v239_v57 = vld [vmem:[%s2554_s1 + $0x158] sm:$0xff]  ;;  %v224_v60 = vld [vmem:[%s2554_s1 + $0xe0] sm:$0xff] }
  0x1e   : > { %v240_v61 = vld [vmem:[%s2554_s1 + $0x160] sm:$0xff]  ;;  %v225_v0 = vld [vmem:[%s2554_s1 + $0xe8] sm:$0xff] }
  0x1f   : > { %v249_v2 = vld.sshfl [vmem:[#allocation1] sm:$0xff pattern:$0x75316420]  ;;  %v250_v3 = vld.sshfl [vmem:[#allocation1 + $0x8] sm:$0xff pattern:$0x75316420] }
  0x20   : > { %1562 = vmatpush.msk.msra.mxu0 %vm396_vm0, %v249_v2  ;;  %1611 = vmatpush.msk.msra.mxu1 %vm396_vm0, %v250_v3 }
  0x21   : > { %1563 = vmatmul.msk.f32.vlgmr.msra.gmra.mxu0 %vm251_vm1, %v196_v1  ;;  %1612 = vmatmul.msk.f32.vlgmr.msra.gmra.mxu1 %vm251_vm1, %v196_v1  ;;  %v241_v1 = vld [vmem:[%s2554_s1 + $0x168] sm:$0xff] }
  0x22   : > { %1699 = vmatpush.msk.msra.mxu2 %vm396_vm0, %v249_v2  ;;  %1700 = vmatpush.msk.msra.mxu3 %vm396_vm0, %v250_v3 }
  0x23   : > { %1604 = vmatmul.msk.f32.vlgmr.msra.gmra.mxu2 %vm251_vm1, %v237_v49  ;;  %1653 = vmatmul.msk.f32.vlgmr.msra.gmra.mxu3 %vm251_vm1, %v237_v49 }
  0x29   : > { %1564 = vmatmul.msk.f32.gmra.mxu0 %vm251_vm1, %v197_v4  ;;  %1613 = vmatmul.msk.f32.gmra.mxu1 %vm251_vm1, %v197_v4  ;;  %v226_v4 = vld [vmem:[%s2554_s1 + $0xf0] sm:$0xff] }
  0x2b   : > { %1605 = vmatmul.msk.f32.gmra.mxu2 %vm251_vm1, %v238_v53  ;;  %1654 = vmatmul.msk.f32.gmra.mxu3 %vm251_vm1, %v238_v53 }
  0x31   : > { %1565 = vmatmul.msk.f32.gmra.mxu0 %vm251_vm1, %v198_v5  ;;  %1614 = vmatmul.msk.f32.gmra.mxu1 %vm251_vm1, %v198_v5  ;;  %v242_v5 = vld [vmem:[%s2554_s1 + $0x170] sm:$0xff] }
  0x33   : > { %1606 = vmatmul.msk.f32.gmra.mxu2 %vm251_vm1, %v239_v57  ;;  %1655 = vmatmul.msk.f32.gmra.mxu3 %vm251_vm1, %v239_v57 }
  0x39   : > { %1566 = vmatmul.msk.f32.gmra.mxu0 %vm251_vm1, %v199_v6  ;;  %1615 = vmatmul.msk.f32.gmra.mxu1 %vm251_vm1, %v199_v6 }
  0x3b   : > { %1607 = vmatmul.msk.f32.gmra.mxu2 %vm251_vm1, %v240_v61  ;;  %1656 = vmatmul.msk.f32.gmra.mxu3 %vm251_vm1, %v240_v61 }
  0x41   : > { %1567 = vmatmul.msk.f32.gmra.mxu0 %vm251_vm1, %v200_v7  ;;  %1616 = vmatmul.msk.f32.gmra.mxu1 %vm251_vm1, %v200_v7 }
  0x43   : > { %1608 = vmatmul.msk.f32.gmra.mxu2 %vm251_vm1, %v241_v1  ;;  %1657 = vmatmul.msk.f32.gmra.mxu3 %vm251_vm1, %v241_v1 }
  0x49   : > { %1568 = vmatmul.msk.f32.gmra.mxu0 %vm251_vm1, %v201_v8  ;;  %1617 = vmatmul.msk.f32.gmra.mxu1 %vm251_vm1, %v201_v8  ;;  %v227_v8 = vld [vmem:[%s2554_s1 + $0xf8] sm:$0xff] }
  0x4b   : > { %1609 = vmatmul.msk.f32.gmra.mxu2 %vm251_vm1, %v242_v5  ;;  %1658 = vmatmul.msk.f32.gmra.mxu3 %vm251_vm1, %v242_v5 }
  0x51   : > { %1569 = vmatmul.msk.f32.gmra.mxu0 %vm251_vm1, %v202_v9  ;;  %1618 = vmatmul.msk.f32.gmra.mxu1 %vm251_vm1, %v202_v9  ;;  %v243_v9 = vld [vmem:[%s2554_s1 + $0x178] sm:$0xff] }
  0x53   : > { %1610 = vmatmul.msk.f32.gmra.mxu2 %vm251_vm1, %v243_v9  ;;  %1659 = vmatmul.msk.f32.gmra.mxu3 %vm251_vm1, %v243_v9 }
  0x59   : > { %1570 = vmatmul.msk.f32.gmra.mxu0 %vm251_vm1, %v203_v10  ;;  %1619 = vmatmul.msk.f32.gmra.mxu1 %vm251_vm1, %v203_v10 }
  0x61   : > { %1571 = vmatmul.msk.f32.gmra.mxu0 %vm251_vm1, %v204_v11  ;;  %1620 = vmatmul.msk.f32.gmra.mxu1 %vm251_vm1, %v204_v11 }
  0x69   : > { %1572 = vmatmul.msk.f32.gmra.mxu0 %vm251_vm1, %v205_v12  ;;  %1621 = vmatmul.msk.f32.gmra.mxu1 %vm251_vm1, %v205_v12 }
  0x71   : > { %1573 = vmatmul.msk.f32.gmra.mxu0 %vm251_vm1, %v206_v13  ;;  %1622 = vmatmul.msk.f32.gmra.mxu1 %vm251_vm1, %v206_v13 }
  0x79   : > { %1574 = vmatmul.msk.f32.gmra.mxu0 %vm251_vm1, %v207_v14  ;;  %1623 = vmatmul.msk.f32.gmra.mxu1 %vm251_vm1, %v207_v14 }
  0x81   : > { %1575 = vmatmul.msk.f32.gmra.mxu0 %vm251_vm1, %v208_v15  ;;  %1624 = vmatmul.msk.f32.gmra.mxu1 %vm251_vm1, %v208_v15 }
  0x89   : > { %1576 = vmatmul.msk.f32.gmra.mxu0 %vm251_vm1, %v209_v16  ;;  %1625 = vmatmul.msk.f32.gmra.mxu1 %vm251_vm1, %v209_v16 }
  0x91   : > { %1577 = vmatmul.msk.f32.gmra.mxu0 %vm251_vm1, %v210_v17  ;;  %1626 = vmatmul.msk.f32.gmra.mxu1 %vm251_vm1, %v210_v17 }
  0x99   : > { %1578 = vmatmul.msk.f32.gmra.mxu0 %vm251_vm1, %v211_v18  ;;  %1627 = vmatmul.msk.f32.gmra.mxu1 %vm251_vm1, %v211_v18 }
  0x9e   : > { %v2034_v19 = vpop.f32.mrf.mxu0  ;;  %v2036_v20 = vpop.f32.mrf.mxu1 }
  0xa1   : > { %1579 = vmatmul.msk.f32.gmra.mxu0 %vm251_vm1, %v212_v21  ;;  %1628 = vmatmul.msk.f32.gmra.mxu1 %vm251_vm1, %v212_v21 }
  0xa6   : > { %v2043_v22 = vpop.f32.mrf.mxu0  ;;  %v2045_v23 = vpop.f32.mrf.mxu1 }
  0xa9   : > { %1580 = vmatmul.msk.f32.gmra.mxu0 %vm251_vm1, %v213_v24  ;;  %1629 = vmatmul.msk.f32.gmra.mxu1 %vm251_vm1, %v213_v24 }
  0xae   : > { %v2052_v25 = vpop.f32.mrf.mxu0  ;;  %v2054_v26 = vpop.f32.mrf.mxu1 }
  0xb1   : > { %1581 = vmatmul.msk.f32.gmra.mxu0 %vm251_vm1, %v214_v27  ;;  %1630 = vmatmul.msk.f32.gmra.mxu1 %vm251_vm1, %v214_v27 }
  0xb6   : > { %v2061_v28 = vpop.f32.mrf.mxu0  ;;  %v2063_v29 = vpop.f32.mrf.mxu1 }
  0xb9   : > { %1582 = vmatmul.msk.f32.gmra.mxu0 %vm251_vm1, %v215_v30  ;;  %1631 = vmatmul.msk.f32.gmra.mxu1 %vm251_vm1, %v215_v30 }
  0xbe   : > { %v2070_v31 = vpop.f32.mrf.mxu0  ;;  %v2072_v32 = vpop.f32.mrf.mxu1 }
  0xc1   : > { %1583 = vmatmul.msk.f32.gmra.mxu0 %vm251_vm1, %v216_v33  ;;  %1632 = vmatmul.msk.f32.gmra.mxu1 %vm251_vm1, %v216_v33 }
  0xc6   : > { %v2079_v34 = vpop.f32.mrf.mxu0  ;;  %v2081_v35 = vpop.f32.mrf.mxu1 }
  0xc9   : > { %1584 = vmatmul.msk.f32.gmra.mxu0 %vm251_vm1, %v217_v36  ;;  %1633 = vmatmul.msk.f32.gmra.mxu1 %vm251_vm1, %v217_v36 }
  0xce   : > { %v2088_v37 = vpop.f32.mrf.mxu0  ;;  %v2090_v38 = vpop.f32.mrf.mxu1 }
  0xd1   : > { %1585 = vmatmul.msk.f32.gmra.mxu0 %vm251_vm1, %v218_v39  ;;  %1634 = vmatmul.msk.f32.gmra.mxu1 %vm251_vm1, %v218_v39 }
  0xd6   : > { %v2097_v40 = vpop.f32.mrf.mxu0  ;;  %v2099_v41 = vpop.f32.mrf.mxu1 }
  0xd9   : > { %1586 = vmatmul.msk.f32.gmra.mxu0 %vm251_vm1, %v219_v42  ;;  %1635 = vmatmul.msk.f32.gmra.mxu1 %vm251_vm1, %v219_v42 }
  0xde   : > { %v2106_v43 = vpop.f32.mrf.mxu0  ;;  %v2108_v44 = vpop.f32.mrf.mxu1 }
  0xe1   : > { %1587 = vmatmul.msk.f32.gmra.mxu0 %vm251_vm1, %v220_v45  ;;  %1636 = vmatmul.msk.f32.gmra.mxu1 %vm251_vm1, %v220_v45 }
  0xe6   : > { %v2115_v46 = vpop.f32.mrf.mxu0  ;;  %v2117_v47 = vpop.f32.mrf.mxu1 }
  0xe9   : > { %1588 = vmatmul.msk.f32.gmra.mxu0 %vm251_vm1, %v221_v48  ;;  %1637 = vmatmul.msk.f32.gmra.mxu1 %vm251_vm1, %v221_v48 }
  0xee   : > { %v2127_v50 = vpop.f32.mrf.mxu0  ;;  %v2129_v51 = vpop.f32.mrf.mxu1 }
  0xf1   : > { %1589 = vmatmul.msk.f32.gmra.mxu0 %vm251_vm1, %v222_v52  ;;  %1638 = vmatmul.msk.f32.gmra.mxu1 %vm251_vm1, %v222_v52 }
  0xf6   : > { %v2141_v54 = vpop.f32.mrf.mxu0  ;;  %v2143_v55 = vpop.f32.mrf.mxu1 }
  0xf9   : > { %1590 = vmatmul.msk.f32.gmra.mxu0 %vm251_vm1, %v223_v56  ;;  %1639 = vmatmul.msk.f32.gmra.mxu1 %vm251_vm1, %v223_v56 }
  0xfe   : > { %v2155_v58 = vpop.f32.mrf.mxu0  ;;  %v2157_v59 = vpop.f32.mrf.mxu1 }
 0x101   : > { %1591 = vmatmul.msk.f32.gmra.mxu0 %vm251_vm1, %v224_v60  ;;  %1640 = vmatmul.msk.f32.gmra.mxu1 %vm251_vm1, %v224_v60 }
 0x106   : > { %v2169_v62 = vpop.f32.mrf.mxu0  ;;  %v2171_v63 = vpop.f32.mrf.mxu1 }
 0x109   : > { %1592 = vmatmul.msk.f32.gmra.mxu0 %vm251_vm1, %v225_v0  ;;  %1641 = vmatmul.msk.f32.gmra.mxu1 %vm251_vm1, %v225_v0 }
 0x10e   : > { %v2183_v2 = vpop.f32.mrf.mxu0  ;;  %v2185_v3 = vpop.f32.mrf.mxu1 }
 0x111   : > { %1593 = vmatmul.msk.f32.gmra.mxu0 %vm251_vm1, %v226_v4  ;;  %1642 = vmatmul.msk.f32.gmra.mxu1 %vm251_vm1, %v226_v4 }
 0x116   : > { %v2197_v6 = vpop.f32.mrf.mxu0  ;;  %v2199_v7 = vpop.f32.mrf.mxu1 }
 0x119   : > { %1594 = vmatmul.msk.f32.gmra.mxu0 %vm251_vm1, %v227_v8  ;;  %1643 = vmatmul.msk.f32.gmra.mxu1 %vm251_vm1, %v227_v8 }
 0x11e   : > { %v466_v10 = vpop.f32.mrf.mxu0  ;;  %v627_v11 = vpop.f32.mrf.mxu1 }
 0x126   : > { %v469_v12 = vpop.f32.mrf.mxu0  ;;  %v630_v13 = vpop.f32.mrf.mxu1 }
 0x12e   : > { %v472_v14 = vpop.f32.mrf.mxu0  ;;  %v633_v15 = vpop.f32.mrf.mxu1 }
 0x136   : > { %v475_v16 = vpop.f32.mrf.mxu0  ;;  %v636_v17 = vpop.f32.mrf.mxu1 }
 0x137   : > { %735 = vmatpush.xpose.msrb.mxu2 %v475_v16  ;;  %764 = vmatpush.xpose.msrb.mxu3 %v636_v17  ;;  %v228_v16 = vld [vmem:[%s2554_s1 + $0x100] sm:$0xff] }
 0x138   : > { %1595 = vmatmul.msk.f32.gmra.mxu0 %vm251_vm1, %v228_v16  ;;  %1644 = vmatmul.msk.f32.gmra.mxu1 %vm251_vm1, %v228_v16 }
 0x13b   : > { %736 = vmatpush.xpose.msrb.mxu2 %v472_v14  ;;  %765 = vmatpush.xpose.msrb.mxu3 %v633_v15 }
 0x13e   : > { %v478_v18 = vpop.f32.mrf.mxu0  ;;  %v639_v21 = vpop.f32.mrf.mxu1 }
 0x13f   : > { %737 = vmatpush.xpose.msrb.mxu2 %v469_v12  ;;  %766 = vmatpush.xpose.msrb.mxu3 %v630_v13 }
 0x143   : > { %738 = vmatpush.xpose.msrb.mxu2 %v466_v10  ;;  %767 = vmatpush.xpose.msrb.mxu3 %v627_v11 }
 0x146   : > { %v481_v24 = vpop.f32.mrf.mxu0  ;;  %v642_v27 = vpop.f32.mrf.mxu1  ;;  %739 = vmatmul.f32.vlgmr.msrb.gmra.mxu2 %v2034_v19  ;;  %768 = vmatmul.f32.vlgmr.msrb.gmra.mxu3 %v2036_v20 }
 0x14e   : > { %v484_v30 = vpop.f32.mrf.mxu0  ;;  %v645_v33 = vpop.f32.mrf.mxu1  ;;  %742 = vmatmul.f32.gmra.mxu2 %v2043_v22  ;;  %771 = vmatmul.f32.gmra.mxu3 %v2045_v23 }
 0x156   : > { %v487_v36 = vpop.f32.mrf.mxu0  ;;  %v648_v39 = vpop.f32.mrf.mxu1  ;;  %745 = vmatmul.f32.gmra.mxu2 %v2052_v25  ;;  %774 = vmatmul.f32.gmra.mxu3 %v2054_v26 }
 0x157   : > { %793 = vmatpush.xpose.msra.mxu2 %v487_v36  ;;  %822 = vmatpush.xpose.msra.mxu3 %v648_v39 }
 0x15b   : > { %794 = vmatpush.xpose.msra.mxu2 %v484_v30  ;;  %823 = vmatpush.xpose.msra.mxu3 %v645_v33  ;;  %v229_v30 = vld [vmem:[%s2554_s1 + $0x108] sm:$0xff] }
 0x15c   : > { %1596 = vmatmul.msk.f32.gmra.mxu0 %vm251_vm1, %v229_v30  ;;  %1645 = vmatmul.msk.f32.gmra.mxu1 %vm251_vm1, %v229_v30 }
 0x15e   : > { %v490_v42 = vpop.f32.mrf.mxu0  ;;  %v651_v19 = vpop.f32.mrf.mxu1  ;;  %748 = vmatmul.f32.gmra.mxu2 %v2061_v28  ;;  %777 = vmatmul.f32.gmra.mxu3 %v2063_v29 }
 0x15f   : > { %795 = vmatpush.xpose.msra.mxu2 %v481_v24  ;;  %824 = vmatpush.xpose.msra.mxu3 %v642_v27 }
 0x163   : > { %796 = vmatpush.xpose.msra.mxu2 %v478_v18  ;;  %825 = vmatpush.xpose.msra.mxu3 %v639_v21 }
 0x166   : > { %v493_v20 = vpop.f32.mrf.mxu0  ;;  %v654_v22 = vpop.f32.mrf.mxu1  ;;  %797 = vmatmul.f32.vlgmr.msra.gmra.mxu2 %v2070_v31  ;;  %826 = vmatmul.f32.vlgmr.msra.gmra.mxu3 %v2072_v32 }
 0x167   : > { %v2229_v32 = vpop.f32.mrf.mxu2 }
 0x16e   : > { %v496_v23 = vpop.f32.mrf.mxu0  ;;  %v657_v25 = vpop.f32.mrf.mxu1  ;;  %800 = vmatmul.f32.gmra.mxu2 %v2079_v34  ;;  %829 = vmatmul.f32.gmra.mxu3 %v2081_v35 }
 0x16f   : > { %v2231_v34 = vpop.f32.mrf.mxu3 }
 0x176   : > { %v499_v26 = vpop.f32.mrf.mxu0  ;;  %v660_v28 = vpop.f32.mrf.mxu1  ;;  %803 = vmatmul.f32.gmra.mxu2 %v2088_v37  ;;  %832 = vmatmul.f32.gmra.mxu3 %v2090_v38 }
 0x177   : > { %851 = vmatpush.xpose.msrb.mxu2 %v499_v26  ;;  %880 = vmatpush.xpose.msrb.mxu3 %v660_v28  ;;  %v2235_v38 = vpop.f32.mrf.mxu2  ;;  %v2237_v45 = vpop.f32.mrf.mxu3 }
 0x17b   : > { %852 = vmatpush.xpose.msrb.mxu2 %v496_v23  ;;  %881 = vmatpush.xpose.msrb.mxu3 %v657_v25 }
 0x17e   : > { %v502_v29 = vpop.f32.mrf.mxu0  ;;  %v663_v31 = vpop.f32.mrf.mxu1  ;;  %806 = vmatmul.f32.gmra.mxu2 %v2097_v40  ;;  %835 = vmatmul.f32.gmra.mxu3 %v2099_v41 }
 0x17f   : > { %853 = vmatpush.xpose.msrb.mxu2 %v493_v20  ;;  %882 = vmatpush.xpose.msrb.mxu3 %v654_v22  ;;  %v230_v20 = vld [vmem:[%s2554_s1 + $0x110] sm:$0xff] }
 0x180   : > { %1597 = vmatmul.msk.f32.gmra.mxu0 %vm251_vm1, %v230_v20  ;;  %1646 = vmatmul.msk.f32.gmra.mxu1 %vm251_vm1, %v230_v20 }
 0x183   : > { %854 = vmatpush.xpose.msrb.mxu2 %v490_v42  ;;  %883 = vmatpush.xpose.msrb.mxu3 %v651_v19 }
 0x186   : > { %v505_v35 = vpop.f32.mrf.mxu0  ;;  %v666_v37 = vpop.f32.mrf.mxu1  ;;  %855 = vmatmul.f32.vlgmr.msrb.gmra.mxu2 %v2106_v43  ;;  %884 = vmatmul.f32.vlgmr.msrb.gmra.mxu3 %v2108_v44 }
 0x187   : > { %v2243_v43 = vpop.f32.mrf.mxu2  ;;  %v2245_v44 = vpop.f32.mrf.mxu3 }
 0x18e   : > { %v508_v40 = vpop.f32.mrf.mxu0  ;;  %v669_v41 = vpop.f32.mrf.mxu1  ;;  %858 = vmatmul.f32.gmra.mxu2 %v2115_v46  ;;  %887 = vmatmul.f32.gmra.mxu3 %v2117_v47 }
 0x18f   : > { %v2249_v46 = vpop.f32.mrf.mxu2  ;;  %v2251_v47 = vpop.f32.mrf.mxu3 }
 0x196   : > { %v511_v48 = vpop.f32.mrf.mxu0  ;;  %v672_v49 = vpop.f32.mrf.mxu1  ;;  %861 = vmatmul.f32.gmra.mxu2 %v2127_v50  ;;  %890 = vmatmul.f32.gmra.mxu3 %v2129_v51 }
 0x197   : > { %909 = vmatpush.xpose.msra.mxu2 %v511_v48  ;;  %938 = vmatpush.xpose.msra.mxu3 %v672_v49  ;;  %v2255_v50 = vpop.f32.mrf.mxu2  ;;  %v2257_v51 = vpop.f32.mrf.mxu3 }
 0x19b   : > { %910 = vmatpush.xpose.msra.mxu2 %v508_v40  ;;  %939 = vmatpush.xpose.msra.mxu3 %v669_v41  ;;  %v234_v40 = vld [vmem:[%s2554_s1 + $0x130] sm:$0xff]  ;;  %v235_v41 = vld [vmem:[%s2554_s1 + $0x138] sm:$0xff] }
 0x19e   : > { %864 = vmatmul.f32.gmra.mxu2 %v2141_v54  ;;  %893 = vmatmul.f32.gmra.mxu3 %v2143_v55 }
 0x19f   : > { %911 = vmatpush.xpose.msra.mxu2 %v505_v35  ;;  %940 = vmatpush.xpose.msra.mxu3 %v666_v37  ;;  %v2261_v52 = vpop.f32.mrf.mxu2  ;;  %v2263_v53 = vpop.f32.mrf.mxu3  ;;  %v232_v35 = vld [vmem:[%s2554_s1 + $0x120] sm:$0xff]  ;;  %v233_v37 = vld [vmem:[%s2554_s1 + $0x128] sm:$0xff] }
 0x1a3   : > { %912 = vmatpush.xpose.msra.mxu2 %v502_v29  ;;  %941 = vmatpush.xpose.msra.mxu3 %v663_v31  ;;  %v231_v29 = vld [vmem:[%s2554_s1 + $0x118] sm:$0xff] }
 0x1a4   : > { %1598 = vmatmul.msk.f32.gmra.mxu0 %vm251_vm1, %v231_v29  ;;  %1647 = vmatmul.msk.f32.gmra.mxu1 %vm251_vm1, %v231_v29 }
 0x1a6   : > { %913 = vmatmul.f32.vlgmr.msra.gmra.mxu2 %v2155_v58  ;;  %942 = vmatmul.f32.vlgmr.msra.gmra.mxu3 %v2157_v59 }
 0x1a7   : > { %v2269_v54 = vpop.f32.mrf.mxu2  ;;  %v2271_v55 = vpop.f32.mrf.mxu3 }
 0x1ac   : > { %1599 = vmatmul.msk.f32.gmra.mxu0 %vm251_vm1, %v232_v35  ;;  %1648 = vmatmul.msk.f32.gmra.mxu1 %vm251_vm1, %v232_v35 }
 0x1ae   : > { %916 = vmatmul.f32.gmra.mxu2 %v2169_v62  ;;  %945 = vmatmul.f32.gmra.mxu3 %v2171_v63 }
 0x1b4   : > { %1600 = vmatmul.msk.f32.gmra.mxu0 %vm251_vm1, %v233_v37  ;;  %1649 = vmatmul.msk.f32.gmra.mxu1 %vm251_vm1, %v233_v37 }
 0x1b6   : > { %919 = vmatmul.f32.gmra.mxu2 %v2183_v2  ;;  %948 = vmatmul.f32.gmra.mxu3 %v2185_v3 }
 0x1bc   : > { %1601 = vmatmul.msk.f32.gmra.mxu0 %vm251_vm1, %v234_v40  ;;  %1650 = vmatmul.msk.f32.gmra.mxu1 %vm251_vm1, %v234_v40 }
 0x1be   : > { %922 = vmatmul.f32.gmra.mxu2 %v2197_v6  ;;  %951 = vmatmul.f32.gmra.mxu3 %v2199_v7 }
 0x1c4   : > { %1602 = vmatmul.msk.f32.gmra.mxu0 %vm251_vm1, %v235_v41  ;;  %1651 = vmatmul.msk.f32.gmra.mxu1 %vm251_vm1, %v235_v41 }
 0x1c9   : > { %v740_v56 = vpop.f32.mrf.mxu2  ;;  %v769_v57 = vpop.f32.mrf.mxu3 }
 0x1ca   : > { %v770_v58 = vadd.f32 %v769_v57, %v740_v56 }
 0x1cc   : > { %v2273_v59 = vmul.f32 0.0625, %v770_v58 }
 0x1ce   : > { %v972_v60 = vsel %vm971_vm2, %v2273_v59, -inf }
 0x1cf   : > { %973 = vmax.xlane.f32.xlu0 %v972_v60 }
 0x1d1   : > { %v743_v61 = vpop.f32.mrf.mxu2  ;;  %v772_v62 = vpop.f32.mrf.mxu3 }
 0x1d2   : > { %v773_v63 = vadd.f32 %v772_v62, %v743_v61 }
 0x1d4   : > { %v2277_v0 = vmul.f32 0.0625, %v773_v63 }
 0x1d6   : > { %v975_v1 = vsel %vm971_vm2, %v2277_v0, -inf }
 0x1d7   : > { %976 = vmax.xlane.f32.xlu0 %v975_v1  ;;  %v236_v1 = vld [vmem:[%s2554_s1 + $0x140] sm:$0xff] }
 0x1d8   : > { %1603 = vmatmul.msk.f32.gmra.mxu0 %vm251_vm1, %v236_v1  ;;  %1652 = vmatmul.msk.f32.gmra.mxu1 %vm251_vm1, %v236_v1 }
 0x1d9   : > { %v746_v2 = vpop.f32.mrf.mxu2  ;;  %v775_v3 = vpop.f32.mrf.mxu3 }
 0x1da   : > { %v776_v4 = vadd.f32 %v775_v3, %v746_v2 }
 0x1dc   : > { %v2281_v5 = vmul.f32 0.0625, %v776_v4 }
 0x1de   : > { %v978_v6 = vsel %vm971_vm2, %v2281_v5, -inf }
 0x1df   : > { %979 = vmax.xlane.f32.xlu1 %v978_v6 }
 0x1e1   : > { %v749_v7 = vpop.f32.mrf.mxu2  ;;  %v778_v8 = vpop.f32.mrf.mxu3 }
 0x1e2   : > { %v779_v9 = vadd.f32 %v778_v8, %v749_v7 }
 0x1e4   : > { %v2285_v10 = vmul.f32 0.0625, %v779_v9 }
 0x1e6   : > { %v981_v11 = vsel %vm971_vm2, %v2285_v10, -inf }
 0x1e7   : > { %982 = vmax.xlane.f32.xlu1 %v981_v11 }
 0x1e9   : > { %v798_v12 = vpop.f32.mrf.mxu2  ;;  %v827_v13 = vpop.f32.mrf.mxu3 }
 0x1ea   : > { %v828_v14 = vadd.f32 %v827_v13, %v798_v12 }
 0x1ec   : > { %v2289_v15 = vmul.f32 0.0625, %v828_v14 }
 0x1ee   : > { %v984_v17 = vsel %vm971_vm2, %v2289_v15, -inf }
 0x1ef   : > { %985 = vmax.xlane.f32.xlu2 %v984_v17 }
 0x1f1   : > { %v801_v18 = vpop.f32.mrf.mxu2  ;;  %v830_v21 = vpop.f32.mrf.mxu3 }
 0x1f2   : > { %v831_v24 = vadd.f32 %v830_v21, %v801_v18 }
 0x1f4   : > { %v2298_v27 = vmul.f32 0.0625, %v831_v24 }
 0x1f6   : > { %v987_v33 = vsel %vm971_vm2, %v2298_v27, -inf }
 0x1f7   : > { %988 = vmax.xlane.f32.xlu2 %v987_v33 }
 0x1f9   : > { %v804_v36 = vpop.f32.mrf.mxu2  ;;  %v833_v39 = vpop.f32.mrf.mxu3 }
 0x1fa   : > { %v834_v42 = vadd.f32 %v833_v39, %v804_v36 }
 0x1fc   : > { %v2307_v19 = vmul.f32 0.0625, %v834_v42 }
 0x1fe   : > { %v990_v22 = vsel %vm971_vm2, %v2307_v19, -inf }
 0x1ff   : > { %991 = vmax.xlane.f32.xlu0 %v990_v22 }
 0x201   : > { %v807_v23 = vpop.f32.mrf.mxu2  ;;  %v836_v25 = vpop.f32.mrf.mxu3 }
 0x202   : > { %v837_v26 = vadd.f32 %v836_v25, %v807_v23 }
 0x204   : > { %v2316_v28 = vmul.f32 0.0625, %v837_v26 }
 0x206   : > { %v993_v31 = vsel %vm971_vm2, %v2316_v28, -inf }
 0x207   : > { %994 = vmax.xlane.f32.xlu2 %v993_v31 }
 0x209   : > { %v856_v48 = vpop.f32.mrf.mxu2  ;;  %v885_v49 = vpop.f32.mrf.mxu3 }
 0x20a   : > { %v886_v4 = vadd.f32 %v885_v49, %v856_v48  ;;  %v514_v48 = vpop.f32.mrf.mxu0  ;;  %v675_v49 = vpop.f32.mrf.mxu1 }
 0x211   : > { %v859_v60 = vpop.f32.mrf.mxu2  ;;  %v888_v61 = vpop.f32.mrf.mxu3 }
 0x212   : > { %v889_v13 = vadd.f32 %v888_v61, %v859_v60 }
 0x214   : > { %v2365_v17 = vmul.f32 0.0625, %v889_v13 }
 0x216   : > { %v999_v42 = vsel %vm971_vm2, %v2365_v17, -inf }
 0x219   : > { %v862_v6 = vpop.f32.mrf.mxu2  ;;  %v891_v7 = vpop.f32.mrf.mxu3 }
 0x21a   : > { %v892_v36 = vadd.f32 %v891_v7, %v862_v6 }
 0x21c   : > { %v2374_v20 = vmul.f32 0.0625, %v892_v36 }
 0x21e   : > { %v1002_v37 = vsel %vm971_vm2, %v2374_v20, -inf }
 0x221   : > { %v865_v18 = vpop.f32.mrf.mxu2  ;;  %v894_v24 = vpop.f32.mrf.mxu3 }
 0x222   : > { %v895_v31 = vadd.f32 %v894_v24, %v865_v18 }
 0x224   : > { %v2383_v40 = vmul.f32 0.0625, %v895_v31 }
 0x229   : > { %v914_v25 = vpop.f32.mrf.mxu2  ;;  %v943_v26 = vpop.f32.mrf.mxu3 }
 0x231   : > { %v917_v60 = vpop.f32.mrf.mxu2 }
 0x239   : > { %v920_v13 = vpop.f32.mrf.mxu2 }
 0x242   : > { %v974_v56 = vpop.xlane.xlu0 %973 }
 0x243   : > { %v1020_v57 = vsub.f32 %v2273_v59, %v974_v56 }
 0x245   : > { %v1036_v58 = vmul.f32 1.442695, %v1020_v57 }
 0x247   : > { %1743 = vpow2.f32 %v1036_v58  ;;  %v944_v58 = vadd.f32 %v943_v26, %v914_v25 }
 0x249   : > { %v2392_v1 = vmul.f32 0.0625, %v944_v58 }
 0x24a   : > { %v977_v62 = vpop.xlane.xlu0 %976 }
 0x24b   : > { %v1021_v63 = vsub.f32 %v2277_v0, %v977_v62  ;;  %v2356_v0 = vmul.f32 0.0625, %v886_v4  ;;  %v1005_v62 = vsel %vm971_vm2, %v2383_v40, -inf }
 0x24d   : > { %v2350_v2 = vpop.eup %1743  ;;  %v1038_v3 = vmul.f32 1.442695, %v1021_v63  ;;  %v996_v16 = vsel %vm971_vm2, %v2356_v0, -inf  ;;  %v946_v63 = vpop.f32.mrf.mxu3 }
 0x24e   : > { %v1068_v59 = vsel %vm971_vm2, %v2350_v2, 0.0 }
 0x24f   : > { %1745 = vpow2.f32 %v1038_v3  ;;  %1069 = vadd.xlane.f32.xlu1 %v1068_v59  ;;  %v678_v59 = vpop.f32.mrf.mxu1 }
 0x252   : > { %v980_v8 = vpop.xlane.xlu1 %979 }
 0x253   : > { %v1022_v9 = vsub.f32 %v2281_v5, %v980_v8  ;;  %v947_v8 = vadd.f32 %v946_v63, %v917_v60 }
 0x255   : > { %v2359_v11 = vpop.eup %1745  ;;  %v1040_v12 = vmul.f32 1.442695, %v1022_v9 }
 0x256   : > { %v1071_v14 = vsel %vm971_vm2, %v2359_v11, 0.0 }
 0x257   : > { %1747 = vpow2.f32 %v1040_v12  ;;  %1072 = vadd.xlane.f32.xlu0 %v1071_v14  ;;  %997 = vmax.xlane.f32.xlu1 %v996_v16  ;;  %v1008_v12 = vsel %vm971_vm2, %v2392_v1, -inf  ;;  %v949_v14 = vpop.f32.mrf.mxu3  ;;  %v2401_v16 = vmul.f32 0.0625, %v947_v8  ;;  %v681_v24 = vpop.f32.mrf.mxu1 }
 0x258   : > { %v950_v36 = vadd.f32 %v949_v14, %v920_v13 }
 0x25a   : > { %v983_v21 = vpop.xlane.xlu1 %982 }
 0x25b   : > { %v1023_v5 = vsub.f32 %v2285_v10, %v983_v21 }
 0x25d   : > { %v2368_v30 = vpop.eup %1747  ;;  %v1042_v33 = vmul.f32 1.442695, %v1023_v5 }
 0x25e   : > { %v1074_v39 = vsel %vm971_vm2, %v2368_v30, 0.0 }
 0x25f   : > { %1749 = vpow2.f32 %v1042_v33  ;;  %1075 = vadd.xlane.f32.xlu2 %v1074_v39  ;;  %1000 = vmax.xlane.f32.xlu0 %v999_v42  ;;  %v1011_v42 = vsel %vm971_vm2, %v2401_v16, -inf  ;;  %v952_v26 = vpop.f32.mrf.mxu3 }
 0x262   : > { %v986_v22 = vpop.xlane.xlu2 %985 }
 0x263   : > { %v1024_v23 = vsub.f32 %v2289_v15, %v986_v22  ;;  %v2410_v22 = vmul.f32 0.0625, %v950_v36 }
 0x265   : > { %v2377_v10 = vpop.eup %1749  ;;  %v1044_v29 = vmul.f32 1.442695, %v1024_v23  ;;  %v923_v23 = vpop.f32.mrf.mxu2 }
 0x266   : > { %v1077_v35 = vsel %vm971_vm2, %v2377_v10, 0.0  ;;  %v953_v31 = vadd.f32 %v952_v26, %v923_v23 }
 0x267   : > { %1751 = vpow2.f32 %v1044_v29  ;;  %1078 = vadd.xlane.f32.xlu1 %v1077_v35  ;;  %1003 = vmax.xlane.f32.xlu2 %v1002_v37  ;;  %v1014_v37 = vsel %vm971_vm2, %v2410_v22, -inf }
 0x26a   : > { %v989_v41 = vpop.xlane.xlu2 %988 }
 0x26b   : > { %v1025_v15 = vsub.f32 %v2298_v27, %v989_v41  ;;  %v517_v27 = vpop.f32.mrf.mxu0  ;;  %v2418_v41 = vmul.f32 0.0625, %v953_v31 }
 0x26d   : > { %v2386_v56 = vpop.eup %1751  ;;  %v1046_v57 = vmul.f32 1.442695, %v1025_v15  ;;  %v1017_v58 = vsel %vm971_vm2, %v2418_v41, -inf }
 0x26e   : > { %v1080_v61 = vsel %vm971_vm2, %v2386_v56, 0.0 }
 0x26f   : > { %1753 = vpow2.f32 %v1046_v57  ;;  %1081 = vadd.xlane.f32.xlu0 %v1080_v61  ;;  %1006 = vmax.xlane.f32.xlu1 %v1005_v62 }
 0x272   : > { %v992_v3 = vpop.xlane.xlu0 %991 }
 0x273   : > { %v1026_v4 = vsub.f32 %v2307_v19, %v992_v3  ;;  %v520_v19 = vpop.f32.mrf.mxu0 }
 0x275   : > { %v2395_v6 = vpop.eup %1753  ;;  %v1048_v7 = vmul.f32 1.442695, %v1026_v4 }
 0x276   : > { %v1083_v9 = vsel %vm971_vm2, %v2395_v6, 0.0 }
 0x277   : > { %1755 = vpow2.f32 %v1048_v7  ;;  %1084 = vadd.xlane.f32.xlu2 %v1083_v9  ;;  %1009 = vmax.xlane.f32.xlu0 %v1008_v12 }
 0x27a   : > { %v995_v18 = vpop.xlane.xlu2 %994 }
 0x27b   : > { %v1027_v21 = vsub.f32 %v2316_v28, %v995_v18  ;;  %v523_v25 = vpop.f32.mrf.mxu0  ;;  %v684_v28 = vpop.f32.mrf.mxu1 }
 0x27c   : > { %1172 = vmatpush.msrb.mxu2 %v523_v25  ;;  %1201 = vmatpush.msrb.mxu3 %v684_v28 }
 0x27d   : > { %v2404_v5 = vpop.eup %1755  ;;  %v1050_v33 = vmul.f32 1.442695, %v1027_v21 }
 0x27e   : > { %v1086_v39 = vsel %vm971_vm2, %v2404_v5, 0.0  ;;  %1173 = vmatpush.msrb.mxu2 %v520_v19  ;;  %1202 = vmatpush.msrb.mxu3 %v681_v24 }
 0x27f   : > { %1757 = vpow2.f32 %v1050_v33  ;;  %1087 = vadd.xlane.f32.xlu1 %v1086_v39  ;;  %1012 = vmax.xlane.f32.xlu2 %v1011_v42 }
 0x280   : > { %1203 = vmatpush.msrb.mxu3 %v678_v59  ;;  %1174 = vmatpush.msrb.mxu2 %v517_v27 }
 0x282   : > { %1175 = vmatpush.msrb.mxu2 %v514_v48  ;;  %1204 = vmatpush.msrb.mxu3 %v675_v49 }
 0x283   : > { %v526_v15 = vpop.f32.mrf.mxu0  ;;  %v687_v57 = vpop.f32.mrf.mxu1 }
 0x285   : > { %v2412_v29 = vpop.eup %1757 }
 0x286   : > { %v1089_v35 = vsel %vm971_vm2, %v2412_v29, 0.0 }
 0x287   : > { %1090 = vadd.xlane.f32.xlu0 %v1089_v35  ;;  %1015 = vmax.xlane.f32.xlu1 %v1014_v37 }
 0x28b   : > { %v529_v60 = vpop.f32.mrf.mxu0  ;;  %v690_v61 = vpop.f32.mrf.mxu1 }
 0x28f   : > { %1018 = vmax.xlane.f32.xlu0 %v1017_v58 }
 0x293   : > { %v532_v62 = vpop.f32.mrf.mxu0  ;;  %v693_v63 = vpop.f32.mrf.mxu1 }
 0x29b   : > { %v535_v3 = vpop.f32.mrf.mxu0  ;;  %v696_v4 = vpop.f32.mrf.mxu1 }
 0x29c   : > { %1242 = vmatpush.msra.mxu2 %v535_v3  ;;  %1271 = vmatpush.msra.mxu3 %v696_v4 }
 0x29e   : > { %1243 = vmatpush.msra.mxu2 %v532_v62  ;;  %1272 = vmatpush.msra.mxu3 %v693_v63 }
 0x2a0   : > { %1244 = vmatpush.msra.mxu2 %v529_v60  ;;  %1273 = vmatpush.msra.mxu3 %v690_v61 }
 0x2a2   : > { %1245 = vmatpush.msra.mxu2 %v526_v15  ;;  %1274 = vmatpush.msra.mxu3 %v687_v57 }
 0x2a3   : > { %v538_v12 = vpop.f32.mrf.mxu0 }
 0x2c2   : > { %v1070_v48 = vpop.xlane.xlu1 %1069 }
 0x2c3   : > { %1759 = vrcp.f32 %v1070_v48 }
 0x2c9   : > { %v1760_v49 = vpop.eup %1759 }
 0x2ca   : > { %v1132_v27 = vmul.f32 %v1760_v49, %v2350_v2  ;;  %v1073_v59 = vpop.xlane.xlu0 %1072  ;;  %v998_v7 = vpop.xlane.xlu1 %997 }
 0x2cb   : > { %1761 = vrcp.f32 %v1073_v59  ;;  %v1028_v8 = vsub.f32 %v2356_v0, %v998_v7  ;;  %v699_v2 = vpop.f32.mrf.mxu1 }
 0x2cc   : > { %1660 = vmatmul.msk.f32.vlgmr.msrb.gmra.mxu2 %vm971_vm2, %v1132_v27  ;;  %1664 = vmatmul.msk.f32.vlgmr.msrb.gmra.mxu3 %vm971_vm2, %v1132_v27 }
 0x2cd   : > { %v1052_v9 = vmul.f32 1.442695, %v1028_v8  ;;  %1312 = vmatpush.msrb.mxu2 %v2243_v43  ;;  %1341 = vmatpush.msrb.mxu3 %v2245_v44 }
 0x2cf   : > { %1763 = vpow2.f32 %v1052_v9  ;;  %1313 = vmatpush.msrb.mxu2 %v2235_v38  ;;  %1342 = vmatpush.msrb.mxu3 %v2237_v45 }
 0x2d1   : > { %v1762_v13 = vpop.eup %1761  ;;  %1314 = vmatpush.msrb.mxu2 %v2229_v32  ;;  %1343 = vmatpush.msrb.mxu3 %v2231_v34 }
 0x2d2   : > { %v1076_v0 = vpop.xlane.xlu2 %1075  ;;  %v1001_v14 = vpop.xlane.xlu0 %1000  ;;  %v1133_v18 = vmul.f32 %v1762_v13, %v2359_v11 }
 0x2d3   : > { %1765 = vrcp.f32 %v1076_v0  ;;  %v1029_v43 = vsub.f32 %v2365_v17, %v1001_v14  ;;  %1315 = vmatpush.msrb.mxu2 %v538_v12  ;;  %1344 = vmatpush.msrb.mxu3 %v699_v2 }
 0x2d4   : > { %1661 = vmatmul.msk.f32.gmra.mxu2 %vm971_vm2, %v1133_v18  ;;  %1665 = vmatmul.msk.f32.gmra.mxu3 %vm971_vm2, %v1133_v18 }
 0x2d5   : > { %v2436_v38 = vpop.eup %1763  ;;  %v1054_v45 = vmul.f32 1.442695, %v1029_v43 }
 0x2d6   : > { %v1092_v32 = vsel %vm971_vm2, %v2436_v38, 0.0 }
 0x2d7   : > { %1767 = vpow2.f32 %v1054_v45  ;;  %1093 = vadd.xlane.f32.xlu2 %v1092_v32 }
 0x2d9   : > { %v1766_v34 = vpop.eup %1765 }
 0x2da   : > { %v1079_v44 = vpop.xlane.xlu1 %1078  ;;  %v1004_v11 = vpop.xlane.xlu2 %1003  ;;  %v1134_v19 = vmul.f32 %v1766_v34, %v2368_v30 }
 0x2db   : > { %1769 = vrcp.f32 %v1079_v44  ;;  %v1030_v17 = vsub.f32 %v2374_v20, %v1004_v11 }
 0x2dc   : > { %1662 = vmatmul.msk.f32.gmra.mxu2 %vm971_vm2, %v1134_v19  ;;  %1666 = vmatmul.msk.f32.gmra.mxu3 %vm971_vm2, %v1134_v19 }
 0x2dd   : > { %v2444_v21 = vpop.eup %1767  ;;  %v1056_v24 = vmul.f32 1.442695, %v1030_v17 }
 0x2de   : > { %v1095_v33 = vsel %vm971_vm2, %v2444_v21, 0.0 }
 0x2df   : > { %1771 = vpow2.f32 %v1056_v24  ;;  %1096 = vadd.xlane.f32.xlu1 %v1095_v33 }
 0x2e1   : > { %v1770_v36 = vpop.eup %1769 }
 0x2e2   : > { %v1082_v39 = vpop.xlane.xlu0 %1081  ;;  %v1007_v42 = vpop.xlane.xlu1 %1006  ;;  %v1135_v30 = vmul.f32 %v1770_v36, %v2377_v10 }
 0x2e3   : > { %1773 = vrcp.f32 %v1082_v39  ;;  %v1031_v20 = vsub.f32 %v2383_v40, %v1007_v42 }
 0x2e4   : > { %1663 = vmatmul.msk.f32.gmra.mxu2 %vm971_vm2, %v1135_v30  ;;  %1667 = vmatmul.msk.f32.gmra.mxu3 %vm971_vm2, %v1135_v30 }
 0x2e5   : > { %v2452_v23 = vpop.eup %1771  ;;  %v1058_v25 = vmul.f32 1.442695, %v1031_v20 }
 0x2e6   : > { %v1098_v26 = vsel %vm971_vm2, %v2452_v23, 0.0 }
 0x2e7   : > { %1775 = vpow2.f32 %v1058_v25  ;;  %1099 = vadd.xlane.f32.xlu2 %v1098_v26 }
 0x2e9   : > { %v1774_v28 = vpop.eup %1773 }
 0x2ea   : > { %v1136_v31 = vmul.f32 %v1774_v28, %v2386_v56  ;;  %v1085_v35 = vpop.xlane.xlu2 %1084  ;;  %v1010_v10 = vpop.xlane.xlu0 %1009 }
 0x2eb   : > { %1777 = vrcp.f32 %v1085_v35  ;;  %v1032_v40 = vsub.f32 %v2392_v1, %v1010_v10 }
 0x2ec   : > { %1668 = vmatmul.msk.f32.vlgmr.msra.gmra.mxu2 %vm971_vm2, %v1136_v31  ;;  %1672 = vmatmul.msk.f32.vlgmr.msra.gmra.mxu3 %vm971_vm2, %v1136_v31 }
 0x2ed   : > { %v2460_v37 = vpop.eup %1775  ;;  %v1060_v15 = vmul.f32 1.442695, %v1032_v40  ;;  %1382 = vmatpush.msra.mxu2 %v2269_v54  ;;  %1411 = vmatpush.msra.mxu3 %v2271_v55 }
 0x2ee   : > { %v1101_v57 = vsel %vm971_vm2, %v2460_v37, 0.0 }
 0x2ef   : > { %1779 = vpow2.f32 %v1060_v15  ;;  %1383 = vmatpush.msra.mxu2 %v2261_v52  ;;  %1412 = vmatpush.msra.mxu3 %v2263_v53 }
 0x2f0   : > { %1102 = vadd.xlane.f32.xlu0 %v1101_v57 }
 0x2f1   : > { %v1778_v56 = vpop.eup %1777  ;;  %1384 = vmatpush.msra.mxu2 %v2255_v50  ;;  %1413 = vmatpush.msra.mxu3 %v2257_v51 }
 0x2f2   : > { %v1088_v1 = vpop.xlane.xlu1 %1087  ;;  %v1013_v58 = vpop.xlane.xlu2 %1012  ;;  %v1137_v54 = vmul.f32 %v1778_v56, %v2395_v6 }
 0x2f3   : > { %1414 = vmatpush.msra.mxu3 %v2251_v47  ;;  %1781 = vrcp.f32 %v1088_v1  ;;  %v1033_v55 = vsub.f32 %v2401_v16, %v1013_v58  ;;  %1385 = vmatpush.msra.mxu2 %v2249_v46 }
 0x2f4   : > { %1669 = vmatmul.msk.f32.gmra.mxu2 %vm971_vm2, %v1137_v54  ;;  %1673 = vmatmul.msk.f32.gmra.mxu3 %vm971_vm2, %v1137_v54 }
 0x2f5   : > { %v1780_v52 = vpop.eup %1779  ;;  %v1062_v53 = vmul.f32 1.442695, %v1033_v55 }
 0x2f6   : > { %v1104_v50 = vsel %vm971_vm2, %v1780_v52, 0.0 }
 0x2f7   : > { %1783 = vpow2.f32 %v1062_v53  ;;  %1105 = vadd.xlane.f32.xlu1 %v1104_v50 }
 0x2f9   : > { %v1782_v51 = vpop.eup %1781 }
 0x2fa   : > { %v1091_v60 = vpop.xlane.xlu0 %1090  ;;  %v1016_v6 = vpop.xlane.xlu1 %1015  ;;  %v1138_v47 = vmul.f32 %v1782_v51, %v2404_v5 }
 0x2fb   : > { %1785 = vrcp.f32 %v1091_v60  ;;  %v1034_v16 = vsub.f32 %v2410_v22, %v1016_v6 }
 0x2fc   : > { %1670 = vmatmul.msk.f32.gmra.mxu2 %vm971_vm2, %v1138_v47  ;;  %1674 = vmatmul.msk.f32.gmra.mxu3 %vm971_vm2, %v1138_v47 }
 0x2fd   : > { %v1784_v46 = vpop.eup %1783  ;;  %v1064_v61 = vmul.f32 1.442695, %v1034_v16 }
 0x2fe   : > { %v1107_v62 = vsel %vm971_vm2, %v1784_v46, 0.0 }
 0x2ff   : > { %1787 = vpow2.f32 %v1064_v61  ;;  %1108 = vadd.xlane.f32.xlu2 %v1107_v62 }
 0x301   : > { %v1786_v63 = vpop.eup %1785 }
 0x302   : > { %v1019_v3 = vpop.xlane.xlu0 %1018  ;;  %v1139_v4 = vmul.f32 %v1786_v63, %v2412_v29 }
 0x303   : > { %v1035_v48 = vsub.f32 %v2418_v41, %v1019_v3  ;;  %v245_v3 = vld [vmem:[%s2556_s3] sm:$0xf] }
 0x304   : > { %1671 = vmatmul.msk.f32.gmra.mxu2 %vm971_vm2, %v1139_v4  ;;  %1675 = vmatmul.msk.f32.gmra.mxu3 %vm971_vm2, %v1139_v4  ;;  %v1871_v4 = vmov 0  }
 0x305   : > { %v1788_v5 = vpop.eup %1787  ;;  %v1066_v22 = vmul.f32 1.442695, %v1035_v48  ;;  %1741 = vset.pattern.permute.xlu2 %v1871_v4  ;;  %1742 = vset.pattern.permute.xlu0 %v1871_v4  ;;  %v244_v48 = vld [vmem:[%s2555_s2] sm:$0xf] }
 0x306   : > { %v1110_v49 = vsel %vm971_vm2, %v1788_v5, 0.0 }
 0x307   : > { %1789 = vpow2.f32 %v1066_v22  ;;  %1111 = vadd.xlane.f32.xlu0 %v1110_v49 }
 0x30d   : > { %v1790_v27 = vpop.eup %1789 }
 0x30e   : > { %v1113_v59 = vsel %vm971_vm2, %v1790_v27, 0.0 }
 0x30f   : > { %1114 = vadd.xlane.f32.xlu1 %v1113_v59 }
 0x317   : > { %1430 = vperm.xlu2 %1741, %v245_v3  }
 0x34a   : > { %v1094_v7 = vpop.xlane.xlu2 %1093 }
 0x34b   : > { %1791 = vrcp.f32 %v1094_v7 }
 0x34f   : > { %v2506_v36 = vpop.f32.mrf.mxu2  ;;  %v2508_v39 = vpop.f32.mrf.mxu3 }
 0x351   : > { %v1792_v8 = vpop.eup %1791 }
 0x352   : > { %v1140_v29 = vmul.f32 %v1792_v8, %v2436_v38  ;;  %v1097_v41 = vpop.xlane.xlu1 %1096 }
 0x353   : > { %1793 = vrcp.f32 %v1097_v41 }
 0x354   : > { %1676 = vmatmul.msk.f32.vlgmr.msrb.gmra.mxu2 %vm971_vm2, %v1140_v29  ;;  %1680 = vmatmul.msk.f32.vlgmr.msrb.gmra.mxu3 %vm971_vm2, %v1140_v29 }
 0x357   : > { %v1180_v30 = vpop.f32.mrf.mxu2  ;;  %v1209_v20 = vpop.f32.mrf.mxu3 }
 0x359   : > { %v1794_v9 = vpop.eup %1793 }
 0x35a   : > { %v1100_v2 = vpop.xlane.xlu2 %1099  ;;  %v1141_v12 = vmul.f32 %v1794_v9, %v2444_v21 }
 0x35b   : > { %1795 = vrcp.f32 %v1100_v2 }
 0x35c   : > { %1677 = vmatmul.msk.f32.gmra.mxu2 %vm971_vm2, %v1141_v12  ;;  %1681 = vmatmul.msk.f32.gmra.mxu3 %vm971_vm2, %v1141_v12 }
 0x35f   : > { %v1212_v25 = vpop.f32.mrf.mxu3 }
 0x361   : > { %v1796_v13 = vpop.eup %1795 }
 0x362   : > { %v1142_v0 = vmul.f32 %v1796_v13, %v2452_v23  ;;  %v1183_v23 = vpop.f32.mrf.mxu2 }
 0x363   : > { %v1103_v14 = vpop.xlane.xlu0 %1102 }
 0x364   : > { %1797 = vrcp.f32 %v1103_v14  ;;  %1678 = vmatmul.msk.f32.gmra.mxu2 %vm971_vm2, %v1142_v0  ;;  %1682 = vmatmul.msk.f32.gmra.mxu3 %vm971_vm2, %v1142_v0 }
 0x367   : > { %v1215_v28 = vpop.f32.mrf.mxu3 }
 0x36a   : > { %v1798_v18 = vpop.eup %1797  ;;  %v1106_v43 = vpop.xlane.xlu1 %1105 }
 0x36b   : > { %1799 = vrcp.f32 %v1106_v43  ;;  %v1143_v38 = vmul.f32 %v1798_v18, %v2460_v37  ;;  %v1186_v26 = vpop.f32.mrf.mxu2 }
 0x36d   : > { %1679 = vmatmul.msk.f32.gmra.mxu2 %vm971_vm2, %v1143_v38  ;;  %1683 = vmatmul.msk.f32.gmra.mxu3 %vm971_vm2, %v1143_v38 }
 0x36f   : > { %v1276_v35 = vpop.f32.mrf.mxu3 }
 0x371   : > { %v1800_v45 = vpop.eup %1799 }
 0x372   : > { %v1144_v32 = vmul.f32 %v1800_v45, %v1780_v52  ;;  %v1109_v34 = vpop.xlane.xlu2 %1108 }
 0x373   : > { %1801 = vrcp.f32 %v1109_v34  ;;  %v1247_v31 = vpop.f32.mrf.mxu2 }
 0x375   : > { %1684 = vmatmul.msk.f32.vlgmr.msra.gmra.mxu2 %vm971_vm2, %v1144_v32  ;;  %1688 = vmatmul.msk.f32.vlgmr.msra.gmra.mxu3 %vm971_vm2, %v1144_v32 }
 0x377   : > { %v1279_v40 = vpop.f32.mrf.mxu3 }
 0x379   : > { %v1802_v44 = vpop.eup %1801 }
 0x37a   : > { %v1112_v11 = vpop.xlane.xlu0 %1111  ;;  %v1145_v19 = vmul.f32 %v1802_v44, %v1784_v46 }
 0x37b   : > { %1803 = vrcp.f32 %v1112_v11  ;;  %v1250_v10 = vpop.f32.mrf.mxu2 }
 0x37d   : > { %1685 = vmatmul.msk.f32.gmra.mxu2 %vm971_vm2, %v1145_v19  ;;  %1689 = vmatmul.msk.f32.gmra.mxu3 %vm971_vm2, %v1145_v19 }
 0x37f   : > { %v1282_v15 = vpop.f32.mrf.mxu3 }
 0x381   : > { %v1804_v17 = vpop.eup %1803 }
 0x382   : > { %v1146_v21 = vmul.f32 %v1804_v17, %v1788_v5  ;;  %v1115_v24 = vpop.xlane.xlu1 %1114  ;;  %v1431_v5 = vpop.permute.xlu2 %1430 }
 0x383   : > { %1805 = vrcp.f32 %v1115_v24  ;;  %v1253_v37 = vpop.f32.mrf.mxu2 }
 0x385   : > { %1686 = vmatmul.msk.f32.gmra.mxu2 %vm971_vm2, %v1146_v21  ;;  %1690 = vmatmul.msk.f32.gmra.mxu3 %vm971_vm2, %v1146_v21 }
 0x387   : > { %v1285_v56 = vpop.f32.mrf.mxu3 }
 0x389   : > { %v1806_v33 = vpop.eup %1805 }
 0x38a   : > { %v1147_v42 = vmul.f32 %v1806_v33, %v1790_v27 }
 0x38b   : > { %v1256_v57 = vpop.f32.mrf.mxu2 }
 0x38d   : > { %1687 = vmatmul.msk.f32.gmra.mxu2 %vm971_vm2, %v1147_v42  ;;  %1691 = vmatmul.msk.f32.gmra.mxu3 %vm971_vm2, %v1147_v42 }
 0x3d7   : > { %v1317_v1 = vpop.f32.mrf.mxu2  ;;  %v1346_v58 = vpop.f32.mrf.mxu3 }
 0x3df   : > { %v1320_v54 = vpop.f32.mrf.mxu2  ;;  %v1349_v55 = vpop.f32.mrf.mxu3 }
 0x3e7   : > { %v1323_v52 = vpop.f32.mrf.mxu2  ;;  %v1352_v53 = vpop.f32.mrf.mxu3 }
 0x3f0   : > { %v1326_v50 = vpop.f32.mrf.mxu2  ;;  %v1355_v51 = vpop.f32.mrf.mxu3 }
 0x3f8   : > { %v1387_v60 = vpop.f32.mrf.mxu2  ;;  %v1416_v6 = vpop.f32.mrf.mxu3 }
 0x400   : > { %v1390_v47 = vpop.f32.mrf.mxu2  ;;  %v1419_v16 = vpop.f32.mrf.mxu3 }
 0x408   : > { %v1393_v46 = vpop.f32.mrf.mxu2  ;;  %v1422_v61 = vpop.f32.mrf.mxu3 }
 0x410   : > { %v1396_v62 = vpop.f32.mrf.mxu2  ;;  %v1425_v63 = vpop.f32.mrf.mxu3 }
 0x411   : > { %1433 = vmatpush.msrb.mxu2 %v1396_v62  ;;  %1453 = vmatpush.msrb.mxu3 %v1425_v63 }
 0x413   : > { %1434 = vmatpush.msrb.mxu2 %v1393_v46  ;;  %1454 = vmatpush.msrb.mxu3 %v1422_v61 }
 0x415   : > { %1435 = vmatpush.msrb.mxu2 %v1390_v47  ;;  %1455 = vmatpush.msrb.mxu3 %v1419_v16 }
 0x417   : > { %1436 = vmatpush.msrb.mxu2 %v1387_v60  ;;  %1456 = vmatpush.msrb.mxu3 %v1416_v6 }
 0x419   : > { %1437 = vmatpush.msrb.mxu2 %v1326_v50  ;;  %1457 = vmatpush.msrb.mxu3 %v1355_v51 }
 0x41b   : > { %1438 = vmatpush.msrb.mxu2 %v1323_v52  ;;  %1458 = vmatpush.msrb.mxu3 %v1352_v53 }
 0x41d   : > { %1439 = vmatpush.msrb.mxu2 %v1320_v54  ;;  %1459 = vmatpush.msrb.mxu3 %v1349_v55 }
 0x41f   : > { %1440 = vmatpush.msrb.mxu2 %v1317_v1  ;;  %1460 = vmatpush.msrb.mxu3 %v1346_v58 }
 0x421   : > { %1441 = vmatpush.msrb.mxu2 %v1256_v57  ;;  %1461 = vmatpush.msrb.mxu3 %v1285_v56 }
 0x423   : > { %1442 = vmatpush.msrb.mxu2 %v1253_v37  ;;  %1462 = vmatpush.msrb.mxu3 %v1282_v15 }
 0x425   : > { %1443 = vmatpush.msrb.mxu2 %v1250_v10  ;;  %1463 = vmatpush.msrb.mxu3 %v1279_v40 }
 0x427   : > { %1444 = vmatpush.msrb.mxu2 %v1247_v31  ;;  %1464 = vmatpush.msrb.mxu3 %v1276_v35 }
 0x429   : > { %1445 = vmatpush.msrb.mxu2 %v1186_v26  ;;  %1465 = vmatpush.msrb.mxu3 %v1215_v28 }
 0x42b   : > { %1446 = vmatpush.msrb.mxu2 %v1183_v23  ;;  %1466 = vmatpush.msrb.mxu3 %v1212_v25 }
 0x42d   : > { %1447 = vmatpush.msrb.mxu2 %v1180_v30  ;;  %1467 = vmatpush.msrb.mxu3 %v1209_v20 }
 0x42f   : > { %1448 = vmatpush.msrb.mxu2 %v2506_v36  ;;  %1468 = vmatpush.msrb.mxu3 %v2508_v39 }
 0x430   : > { %1469 = vmatmul.f32.vlgmr.msrb.gmra.mxu3 %v244_v48  ;;  %1449 = vmatmul.f32.vlgmr.msrb.gmra.mxu2 %v244_v48 }
 0x4b3   : > { %v1470_v22 = vpop.f32.mrf.mxu3  ;;  %v1450_v49 = vpop.f32.mrf.mxu2 }
 0x4b4   : > { %v1471_v27 = vadd.f32 %v1470_v22, %v1431_v5  ;;  %v1451_v7 = vadd.f32 %v1450_v49, %v1431_v5 }
 0x4b6   : > { %v1475_v59 = vrot.slane %v1471_v27, 4 }
 0x4b8   : > { %v1476_v8 = vsel %vm396_vm0, %v1451_v7, %v1475_v59 }
 0x4b9   : > { %1478 = vst [vmem:[%s190_s10] sm:$0xff] %v1476_v8 }
 0x4ba   : > { %1834 = shalt.err (!%p1831_p3)
}
 0x4bb   : > { %1701 = dma.vmem_to_hbm [thread:$0]  (%p1935_p5), %s1494_s11, 128, %s1496_s12, %s1480_s19  }
 0x4bc PF: > { %p1707_p4 = scmp.ge.s32.totalorder %s1869_s18, 2  ;;  %s1507_s29 = sand.u32 1, %s1857_s15  }
 0x4bd   : > { %s1508_s30 = scalar_lea.sflag [#allocation3], %s1507_s29 }
 0x4be   : > { %p1704_p7 = pnand %p1707_p4, %p1939_p6 }
 0x4c0   : > { %p1705_p8 = pneg %p1704_p7 }
 0x4c2   : > { %1852 = dma.done.wait (%p1705_p8), %s1508_s30, 128  }
 0x4c3   : > { %1854 = vsyncadd (%p1705_p8), %s1508_s30, 4294967168  ;;  %p14_p9 = scmp.ge.s32.totalorder %s1922_s21, 4   ;;  %s2560_s15 = smov %s1861_s16 }
 0x4c4   : > { %s2561_s16 = smov %s1865_s17  ;;  %s2562_s17 = smov %s1933_s24 }
 0x4c5   : > { %s2563_s18 = smov %s1922_s21  ;;  %16 = sbr.rel (!%p14_p9) target bundleno = 3 (0x3), region = 71 }
 0x4ca   :  { %1514 = vsyncpa [#allocation3], 1 }
 0x4cb   :  { %1516 = vsyncpa [#allocation3 + $0x1], 1 }

</bundles_post_ra>
